<compile_context>
chip_gen: v7x
topology: tpu7x:2x2x1
jax: 0.10.0
libtpu: 0.0.40
codegen_flags: <defaults>
</compile_context>

<pallas_src>
import math

import jax
import jax.numpy as jnp
from jax.experimental import pallas as pl
from jax.experimental.pallas import tpu as pltpu

_LANE = 128
_DEFAULT_BLOCK_BYTES = 4 << 20   # 4 MiB blocks for the VMEM fusion scaffold
_MIN_PALLAS_BYTES = 256 * 1024   # below this, pallas_call dispatch overhead dominates
_MIN_GRID_BLOCKS = 4             # need >= 2 blocks per TC on v7x to hide DMA


# --------------------------------------------------------------------------
# Opt-in path: single HBM -> HBM DMA (no VMEM round trip).
# --------------------------------------------------------------------------
def _dma_copy_kernel(x_hbm, o_hbm, sem):
    cp = pltpu.make_async_copy(x_hbm, o_hbm, sem)
    cp.start()
    cp.wait()


def squeeze_last_pallas(x: jax.Array) -> jax.Array:
    """torch.squeeze(dim=-1) via one whole-array HBM->HBM DMA."""
    if x.ndim == 0 or x.shape[-1] != 1:
        return x
    out_shape = x.shape[:-1]
    total = math.prod(out_shape)
    nbytes = total * x.dtype.itemsize
    if total == 0 or nbytes < _MIN_PALLAS_BYTES:
        # Too small to amortize a custom-call dispatch: squeeze is free anyway.
        return jnp.squeeze(x, axis=-1)
    x_flat = x.reshape(out_shape)  # trailing contiguous singleton -> metadata-only
    return pl.pallas_call(
        _dma_copy_kernel,
        out_shape=jax.ShapeDtypeStruct(out_shape, x.dtype),
        in_specs=[pl.BlockSpec(memory_space=pl.ANY)],
        out_specs=pl.BlockSpec(memory_space=pl.ANY),
        scratch_shapes=[pltpu.SemaphoreType.DMA(())],
        cost_estimate=pl.CostEstimate(
            flops=0, transcendentals=0, bytes_accessed=2 * nbytes),
    )(x_flat)


# --------------------------------------------------------------------------
# Fusion scaffold: tiled, pipelined VMEM copy (real compute would go here).
# --------------------------------------------------------------------------
def _copy_kernel(x_ref, o_ref):
    # x_ref / o_ref: (TR, COLS) lane-dense VMEM tiles; pure copy-through.
    o_ref[...] = x_ref[...]


def _min_sublane(dtype) -> int:
    """Native packed sublane granularity: (8,128) f32, (16,128) bf16, (32,128) i8/fp8."""
    itemsize = jnp.dtype(dtype).itemsize
    if itemsize >= 4:
        return 8
    if itemsize == 2:
        return 16
    return 32


def _pick_cols(total: int) -> int:
    """Largest lane-dense (multiple-of-128) column count dividing the flat size."""
    for c in (8192, 4096, 2048, 1024, 512, 256, 128):
        if total % c == 0:
            return c
    return 0


def _pick_row_tile(rows: int, cols: int, itemsize: int, dtype, block_bytes: int) -> int:
    """Largest power-of-two multiple of the dtype sublane granule dividing `rows`
    that fits the block budget.  Returns 0 when no safe tiling exists."""
    min_sub = _min_sublane(dtype)
    max_tr = block_bytes // (cols * itemsize)
    limit = min(rows, max_tr)
    tr = 0
    d = min_sub
    while d <= limit:
        if rows % d == 0:
            tr = d
        d *= 2
    return tr


def squeeze_last_pallas_vmem(x: jax.Array, *, block_bytes: int = _DEFAULT_BLOCK_BYTES) -> jax.Array:
    """Tiled, pipelined VMEM copy that drops a trailing singleton dim.

    Fusion scaffold only: for a bare squeeze prefer jnp.squeeze (free) or
    squeeze_last_pallas (single HBM->HBM DMA).
    """
    if x.ndim == 0 or x.shape[-1] != 1:
        return x
    out_shape = x.shape[:-1]
    total = math.prod(out_shape)
    itemsize = x.dtype.itemsize
    nbytes = total * itemsize
    if total == 0 or nbytes < max(_MIN_PALLAS_BYTES, _MIN_GRID_BLOCKS * block_bytes):
        return jnp.squeeze(x, axis=-1)
    cols = _pick_cols(total)
    if cols == 0:
        return jnp.squeeze(x, axis=-1)
    rows = total // cols
    tr = _pick_row_tile(rows, cols, itemsize, x.dtype, block_bytes)
    if tr == 0 or rows // tr < _MIN_GRID_BLOCKS:
        # Rows don't tile into VMEM-safe blocks (or too few blocks to pipeline /
        # split across v7x cores): fall back to the free metadata-only squeeze
        # instead of risking a full-array block that blows past VMEM.
        return jnp.squeeze(x, axis=-1)

    # in + out, each double-buffered => 4 live blocks; add headroom.  Explicit
    # limit also covers v5e's smaller 16 MiB scoped-VMEM default.
    vmem_limit = min(4 * tr * cols * itemsize + (4 << 20), 48 << 20)

    x2 = x.reshape(rows, cols)  # contiguous data -> metadata-only reshape
    out2 = pl.pallas_call(
        _copy_kernel,
        out_shape=jax.ShapeDtypeStruct((rows, cols), x.dtype),
        grid=(rows // tr,),
        in_specs=[pl.BlockSpec((tr, cols), lambda i: (i, 0))],
        out_specs=pl.BlockSpec((tr, cols), lambda i: (i, 0)),
        compiler_params=pltpu.CompilerParams(
            # Independent output blocks: shard across v7x's 2 TCs (neutral on v5e/v6e).
            dimension_semantics=("parallel",),
            vmem_limit_bytes=vmem_limit,
        ),
        cost_estimate=pl.CostEstimate(
            flops=0, transcendentals=0, bytes_accessed=2 * nbytes),
        # NOTE: input_output_aliases={0: 0} would drop the extra live buffer once
        # this is fused inside a jit with donated args; left off so the scaffold
        # stays safe under eager dispatch.
    )(x2)
    return out2.reshape(out_shape)


# --------------------------------------------------------------------------
# Module mirror
# --------------------------------------------------------------------------
class Squeeze:
    """Mirror of the PyTorch nn.Module (no parameters)."""

    def __init__(self, dim: int = -1, use_pallas: bool = False, pallas_mode: str = "dma"):
        self.dim = dim
        self.use_pallas = use_pallas
        self.pallas_mode = pallas_mode  # "dma" (HBM->HBM) or "vmem" (fusion scaffold)

    def __call__(self, x: jax.Array) -> jax.Array:
        dim = self.dim if self.dim >= 0 else x.ndim + self.dim
        if dim < 0 or dim >= x.ndim or x.shape[dim] != 1:
            # torch.squeeze(dim) is a no-op when that dim is not size 1.
            return x
        if not self.use_pallas or dim != x.ndim - 1:
            # TODO(synk): non-trailing dims always take the free XLA squeeze.
            return jnp.squeeze(x, axis=dim)
        if self.pallas_mode == "vmem":
            return squeeze_last_pallas_vmem(x)
        return squeeze_last_pallas(x)


if __name__ == "__main__":
    key = jax.random.PRNGKey(0)
    k_small, k_big = jax.random.split(key)

    # 1) Typical IQL value/critic-head output: small -> free metadata-only path.
    x_small = jax.random.normal(k_small, (2, 32, 1), dtype=jnp.float32)
    module = Squeeze(dim=-1)
    ref_small = jnp.squeeze(x_small, axis=-1)
    out_small = jax.block_until_ready(module(x_small))
    assert out_small.shape == (2, 32), out_small.shape
    assert out_small.dtype == x_small.dtype
    assert bool(jnp.array_equal(out_small, ref_small))

    # torch.squeeze(dim) no-op case: dim is not size 1 -> input returned unchanged.
    assert module(out_small) is out_small

    # 2) Opt-in Pallas HBM->HBM DMA path: (512, 1024, 1) f32 = 2 MiB.
    x_big = jax.random.normal(k_big, (512, 1024, 1), dtype=jnp.float32)
    ref_big = jnp.squeeze(x_big, axis=-1)
    module_dma = Squeeze(dim=-1, use_pallas=True)
    out_dma = jax.block_until_ready(module_dma(x_big))
    assert out_dma.shape == (512, 1024), out_dma.shape
    assert out_dma.dtype == x_big.dtype
    assert bool(jnp.array_equal(out_dma, ref_big)), "DMA path mismatch vs reference"

    # 3) Tiled-VMEM fusion scaffold, shrunk block budget so this small test input
    #    still yields >= 4 lane-dense (8, 8192) blocks through the pipeline.
    out_vmem = jax.block_until_ready(
        squeeze_last_pallas_vmem(x_big, block_bytes=256 * 1024))
    assert out_vmem.shape == (512, 1024), out_vmem.shape
    assert out_vmem.dtype == x_big.dtype
    assert bool(jnp.array_equal(out_vmem, ref_big)), "VMEM path mismatch vs reference"

    print("KERNEL_OK")
</pallas_src>

<mosaic_0001>
module attributes {stable_mosaic.version = 11 : i64} {
  func.func @_dma_copy_kernel(%arg0: memref<512x1024xf32, #tpu.memory_space<any>>, %arg1: memref<512x1024xf32, #tpu.memory_space<any>>, %arg2: memref<!tpu.dma_semaphore, #tpu.memory_space<semaphore_mem>>) attributes {dimension_semantics = [], scalar_prefetch = 0 : i64, scratch_operands = 1 : i64, tpu.core_type = #tpu.core_type<tc>} {
    tpu.enqueue_dma source(%arg0 : memref<512x1024xf32, #tpu.memory_space<any>>) target(%arg1 : memref<512x1024xf32, #tpu.memory_space<any>>) target_semaphore(%arg2 : memref<!tpu.dma_semaphore, #tpu.memory_space<semaphore_mem>>)
    tpu.wait_dma2 semaphore(%arg2 : memref<!tpu.dma_semaphore, #tpu.memory_space<semaphore_mem>>) src(%arg0 : memref<512x1024xf32, #tpu.memory_space<any>>) dst(%arg1 : memref<512x1024xf32, #tpu.memory_space<any>>)
    return
  }
}

</mosaic_0001>

<bundles_post_ra>
// kernel: tpu_custom_call.1
= control target key start
LH: loop header
LB: loop body
LE: loop exit
PB: predicated region body
PF: predicated region fallthrough
CT: control target
= control target key end

     0   :  { %s35_s6 = smov [#allocation2]   ;;  %s36_s7 = smov [#allocation3]   ;;  %s54_s0 = inlined_call_operand.hbm [shape: f32[512,1024], index: 0, kind: input, shape index: {}]   ;;  %s55_s1 = inlined_call_operand.hbm [shape: f32[512,1024], index: 1, kind: output, shape index: {}]  }
   0x1   :  { %s37_s8 = smov 0  }
   0x2   :  { %18 = dma.general %s54_s0, 65536, %s55_s1, %s35_s6, %s36_s7, [#allocation4], %s37_s8, 0  }
   0x3   :  { %33 = dma.done.wait [#allocation2], 65536 }
   0x4   :  { %34 = vsyncadd [#allocation2], 4294901760 }
   0x5   :  { %23 = vsyncmov [#allocation2] }
   0x8   :  { %s24_s13 = vpop.sfrf %23 }
   0x9   :  { %p29_p0 = scmp.ne.s32.totalorder %s24_s13, 0 }
   0xb   :  { %28 = shalt.err (%p29_p0)  }

</bundles_post_ra>
